<compile_context>
chip_gen: v5e
topology: v5e:2x2
jax: 0.10.0
libtpu: 0.0.40
codegen_flags: <defaults>
</compile_context>

<pallas_src>
import functools
import math

import jax
import jax.numpy as jnp
import numpy as np
from jax.experimental import pallas as pl
from jax.experimental.pallas import tpu as pltpu

EPS = 1e-5                   # BatchNorm2d default eps
_MAX_SUBSLABS = 8            # cap on the unrolled per-step sub-slab loop
_POOL_MAT_LIMIT = 8 << 20    # fuse avg-pool only if its matrix stays under this


# ----------------------------------------------------------------------------
# Per-generation sizing and capability checks
# ----------------------------------------------------------------------------
@functools.lru_cache(maxsize=None)
def _hw_params():
    vmem = None
    try:
        info = pltpu.get_tpu_info()
        for attr in ("vmem_capacity_bytes", "vmem_bytes", "vmem_size_bytes"):
            v = getattr(info, attr, None)
            if v:
                vmem = int(v)
                break
    except Exception:
        vmem = None
    if vmem is None:
        vmem = 64 << 20                       # conservative default (v7x-class)
    if vmem <= (80 << 20):                    # v7x: 64 MiB / TC, 2 TCs per chip
        return dict(budget=18 << 20, cap=48 << 20, lane_target=2048,
                    prefer_even_steps=True)
    # v5e / v6e: 128 MiB VMEM, single TC -> big blocks, few grid steps
    return dict(budget=56 << 20, cap=100 << 20, lane_target=4096,
                prefer_even_steps=False)


@functools.lru_cache(maxsize=None)
def _single_buffer_supported():
    """One-time capability probe for pl.Buffered(1) (single-buffered invariants)."""
    if not hasattr(pl, "Buffered"):
        return False

    def _copy(x_ref, o_ref):
        o_ref[...] = x_ref[...]

    try:
        x = jnp.zeros((8, 128), jnp.float32)
        out = pl.pallas_call(
            _copy,
            out_shape=jax.ShapeDtypeStruct((16, 128), jnp.float32),
            grid=(2,),
            in_specs=[pl.BlockSpec((8, 128), lambda n: (0, 0),
                                   pipeline_mode=pl.Buffered(1))],
            out_specs=pl.BlockSpec((8, 128), lambda n: (n, 0)),
        )(x)
        jax.block_until_ready(out)
        return True
    except Exception:
        return False


# ----------------------------------------------------------------------------
# Kernel body: perturb + grouped 1x1 conv(+BN) + ReLU [+ mix conv(+BN) + ReLU]
#              [+ fused avg pool] [+ fused shortcut / residual add + final ReLU]
# ----------------------------------------------------------------------------
def _make_layer_kernel(*, M, use_act, mix, tail_mode, pool_fused,
                       n_sub, w_in, w_out):
    """n_sub sub-slabs per grid step; each covers r images (w_in input lanes,
    w_out output lanes; w_out < w_in only when the avg-pool is fused)."""

    def kernel(*refs):
        it = iter(refs)
        x_ref = next(it)
        if use_act:
            noise_ref, w1_ref, s1_ref = next(it), next(it), next(it)
        else:
            w1_ref, nbias_ref = next(it), next(it)
        if mix:
            w2_ref, s2_ref = next(it), next(it)
        if pool_fused:
            pmat_ref = next(it)
        if tail_mode == "add":
            res_ref = next(it)
        elif tail_mode == "conv_add":
            xs_ref, ws_ref, ss_ref = next(it), next(it), next(it)
        o_ref = next(it)

        for i in range(n_sub):                        # static unroll, n_sub small
            xs = x_ref[:, pl.ds(i * w_in, w_in)]      # (C, w_in), lane-aligned
            if use_act:
                acc = None
                for m in range(M):                    # per-mask accumulation:
                    y = jnp.maximum(xs + noise_ref[m], 0.0)   # no (M*C, Lb) temp
                    t = jnp.dot(w1_ref[m], y, preferred_element_type=jnp.float32)
                    acc = t if acc is None else acc + t
                z = jnp.maximum(acc + s1_ref[...], 0.0)
            else:
                z = jnp.dot(w1_ref[...], xs, preferred_element_type=jnp.float32)
                z = jnp.maximum(z + nbias_ref[...], 0.0)      # nbias folds shift1
            if mix:
                z = jnp.dot(w2_ref[...], z, preferred_element_type=jnp.float32)
                z = jnp.maximum(z + s2_ref[...], 0.0)
            if pool_fused:                            # exact avg-pool as a matmul
                z = jnp.dot(z, pmat_ref[...], preferred_element_type=jnp.float32)
            if tail_mode == "add":                    # identity shortcut
                z = jnp.maximum(z + res_ref[:, pl.ds(i * w_out, w_out)], 0.0)
            elif tail_mode == "conv_add":             # 1x1-conv+BN shortcut
                rsd = jnp.dot(ws_ref[...], xs_ref[:, pl.ds(i * w_out, w_out)],
                              preferred_element_type=jnp.float32) + ss_ref[...]
                z = jnp.maximum(z + rsd, 0.0)
            o_ref[:, pl.ds(i * w_out, w_out)] = z

    return kernel


# ----------------------------------------------------------------------------
# Helpers: avg-pool matrix, batch-block sizing
# ----------------------------------------------------------------------------
def _avg_pool_matrix(S, s, r):
    """(r*S*S, r*(S//s)**2) block-diagonal average-pooling matrix (row-major HW)."""
    S2 = S // s
    HW_in, HW_out = S * S, S2 * S2
    P = np.zeros((r * HW_in, r * HW_out), np.float32)
    inv = 1.0 / (s * s)
    for n in range(r):
        for h2 in range(S2):
            for w2 in range(S2):
                col = n * HW_out + h2 * S2 + w2
                for dh in range(s):
                    for dw in range(s):
                        row = n * HW_in + (h2 * s + dh) * S + (w2 * s + dw)
                        P[row, col] = inv
    return jnp.asarray(P)


def _choose_batch_block(N, r, unit_out_lanes, per_img_bytes, inv_bytes,
                        temp_bytes, hw):
    """Nb = k*r images per grid step; prefer exact divisors of N, a lane-dense
    output, and (on v7x) even step counts; keep the estimate inside the budget."""
    budget, lane_target = hw["budget"], hw["lane_target"]
    cands = sorted({k * r for k in range(1, _MAX_SUBSLABS + 1) if k * r <= N})
    if not cands:
        cands = [min(r, N)]

    def est(nb):
        return inv_bytes + 2 * nb * per_img_bytes + temp_bytes

    fits = [nb for nb in cands if est(nb) <= budget] or cands[:1]

    def key(nb):
        steps = -(-N // nb)
        divides = (N % nb == 0)
        lane_w = nb * unit_out_lanes
        even = (steps % 2 == 0) or steps == 1
        return (divides, min(lane_w, lane_target),
                even if hw["prefer_even_steps"] else True, -steps)

    return max(fits, key=key)


# ----------------------------------------------------------------------------
# One PerturbLayer as a pallas_call (channel-major layout, batch folded in lanes)
# ----------------------------------------------------------------------------
def _perturb_layer_pallas(prep, x_cm, N, HW_in, *, pool=None, tail=None):
    """x_cm: (C, N*HW_in) f32 -> ((O, N*HW_out), pool_fused).

    pool: None or (pool_type, stride).  'avg' is fused in-kernel; 'max' is left
          to the caller (output stays un-pooled, HW_out == HW_in).
    tail: None
          ('add', res_cm)                       -> out = relu(layer(x) + res)
          ('conv_add', xs_cm, ws_eff, shift_s)  -> out = relu(layer(x) + ws@xs + shift)
    """
    C, O, M = prep["C"], prep["O"], prep["M"]
    use_act, mix = prep["use_act"], prep["mix_maps"]
    tail_mode = None if tail is None else tail[0]
    hw = _hw_params()

    S_in = int(round(math.sqrt(HW_in)))
    s = 1
    pool_fused = False
    if pool is not None and pool[1] > 1:
        s = pool[1]
        pool_fused = (pool[0] == "avg")
    HW_out = HW_in // (s * s) if pool_fused else HW_in

    # replication factor: smallest r with r*HW_out a multiple of 128 (capped at N)
    r = min(128 // math.gcd(HW_out, 128), N)
    w_in, w_out = r * HW_in, r * HW_out

    if pool_fused and 4 * w_in * w_out > _POOL_MAT_LIMIT:
        # TODO(synk): pooling matrix too large to hold as an invariant operand;
        # fall back to the XLA pool for this layer.
        pool_fused = False
        HW_out = HW_in
        r = min(128 // math.gcd(HW_out, 128), N)
        w_in, w_out = r * HW_in, r * HW_out

    # --- byte accounting (streamed, invariant, compute temporaries) ----------
    per_img = 4 * (C * HW_in + O * HW_out)
    if use_act:
        inv_bytes = 4 * (M * C * w_in + M * O * C + O)
    else:
        inv_bytes = 4 * (O * C + O * w_in)
    if mix:
        inv_bytes += 4 * (O * O + O)
    if pool_fused:
        inv_bytes += 4 * w_in * w_out
    if tail_mode == "add":
        per_img += 4 * O * HW_out
    elif tail_mode == "conv_add":
        Cs = tail[1].shape[0]
        per_img += 4 * Cs * HW_out
        inv_bytes += 4 * (O * Cs + O)
    temp_bytes = 2 * 4 * w_in * (2 * C + 3 * O)       # per-sub-slab live temps

    Nb = _choose_batch_block(N, r, HW_out, per_img, inv_bytes, temp_bytes, hw)
    n_sub = Nb // r
    steps = -(-N // Nb)
    Np = steps * Nb
    Lb_in, Lb_out = Nb * HW_in, Nb * HW_out

    pad_imgs = Np - N
    pad_in = (lambda a: a) if pad_imgs == 0 else (
        lambda a: jnp.pad(a, ((0, 0), (0, pad_imgs * HW_in))))
    pad_out = (lambda a: a) if pad_imgs == 0 else (
        lambda a: jnp.pad(a, ((0, 0), (0, pad_imgs * HW_out))))

    # --- operands (order must match kernel unpacking) -------------------------
    inputs = [pad_in(x_cm)]
    if use_act:
        noise_r = (jnp.tile(prep["noise_scaled"], (1, 1, r)) if r > 1
                   else prep["noise_scaled"])
        inputs += [noise_r, prep["w1_mOC"], prep["shift1"]]
    else:
        nbias_r = jnp.tile(prep["nbias"], (1, r)) if r > 1 else prep["nbias"]
        inputs += [prep["w1_collapsed"], nbias_r]
    if mix:
        inputs += [prep["w2_eff"], prep["shift2"]]
    if pool_fused:
        inputs.append(_avg_pool_matrix(S_in, s, r))
    if tail_mode == "add":
        inputs.append(pad_out(tail[1]))
    elif tail_mode == "conv_add":
        inputs += [pad_out(tail[1]), tail[2], tail[3]]

    # --- specs ----------------------------------------------------------------
    sb = _single_buffer_supported()

    def inv_spec(shape):
        idx = (lambda n, _rank=len(shape): (0,) * _rank)
        if sb:
            return pl.BlockSpec(shape, idx, pipeline_mode=pl.Buffered(1))
        return pl.BlockSpec(shape, idx)

    in_specs = [pl.BlockSpec((C, Lb_in), lambda n: (0, n))]
    if use_act:
        in_specs += [inv_spec((M, C, w_in)), inv_spec((M, O, C)), inv_spec((O, 1))]
    else:
        in_specs += [inv_spec((O, C)), inv_spec((O, w_in))]
    if mix:
        in_specs += [inv_spec((O, O)), inv_spec((O, 1))]
    if pool_fused:
        in_specs.append(inv_spec((w_in, w_out)))
    if tail_mode == "add":
        in_specs.append(pl.BlockSpec((O, Lb_out), lambda n: (0, n)))
    elif tail_mode == "conv_add":
        Cs = tail[1].shape[0]
        in_specs += [pl.BlockSpec((Cs, Lb_out), lambda n: (0, n)),
                     inv_spec((O, Cs)), inv_spec((O, 1))]
    out_spec = pl.BlockSpec((O, Lb_out), lambda n: (0, n))

    est = inv_bytes + 2 * Nb * per_img + temp_bytes
    cp_kwargs = dict(dimension_semantics=("parallel",))
    if est > (12 << 20):
        cp_kwargs["vmem_limit_bytes"] = int(min(max(2 * est, 32 << 20), hw["cap"]))
    compiler_params = pltpu.CompilerParams(**cp_kwargs)

    kernel = _make_layer_kernel(M=M, use_act=use_act, mix=mix, tail_mode=tail_mode,
                                pool_fused=pool_fused, n_sub=n_sub,
                                w_in=w_in, w_out=w_out)
    out = pl.pallas_call(
        kernel,
        out_shape=jax.ShapeDtypeStruct((O, Np * HW_out), jnp.float32),
        grid=(steps,),
        in_specs=in_specs,
        out_specs=out_spec,
        compiler_params=compiler_params,
    )(*inputs)
    return out[:, : N * HW_out], pool_fused


# ----------------------------------------------------------------------------
# PerturbBasicBlock forward
# ----------------------------------------------------------------------------
def perturb_basic_block_forward(prep, x, cfg):
    N, C, H, W = x.shape
    O, s = cfg["out_channels"], cfg["stride"]
    HW1 = H * W
    # TODO(synk): when stacking blocks, keep activations channel-major between
    # blocks instead of transposing NCHW <-> (C, N*HW) around every block.
    x_cm = jnp.transpose(x.astype(jnp.float32), (1, 0, 2, 3)).reshape(C, N * HW1)

    pool = (cfg["pool_type"], s) if s > 1 else None
    y, pooled = _perturb_layer_pallas(prep["layer1"], x_cm, N, HW1, pool=pool)

    H2, W2 = H // s, W // s
    HW2 = H2 * W2
    if s > 1 and not pooled:
        # TODO(synk): MAX pool stays an XLA reshape+reduce; fusing it in the
        # lane-major layout needs a strided lane compaction (avg pool IS fused).
        yw = y.reshape(O, N, H2, s, W2, s)
        y = (yw.max(axis=(3, 5)) if cfg["pool_type"] == "max"
             else yw.mean(axis=(3, 5))).reshape(O, N * HW2)

    if "shortcut" in prep:
        xs_cm = x_cm.reshape(C, N, H, W)[:, :, ::s, ::s].reshape(C, N * HW2)
        tail = ("conv_add", xs_cm, prep["shortcut"]["w_eff"], prep["shortcut"]["shift"])
    else:
        assert s == 1 and O == C, (
            "identity shortcut requires stride == 1 and in_channels == out_channels")
        tail = ("add", x_cm)
    y, _ = _perturb_layer_pallas(prep["layer2"], y, N, HW2, tail=tail)

    return jnp.transpose(y.reshape(O, N, H2, W2), (1, 0, 2, 3))


# ----------------------------------------------------------------------------
# Parameter init (raw, mirrors the PyTorch module) and one-time prepare/folding
# ----------------------------------------------------------------------------
def _init_layer_params(key, *, C, O, M, S, unique_masks, mix_maps):
    Cn = C if unique_masks else 1
    G = C if M != 1 else 1
    cpg = (C * M) // G
    ks = jax.random.split(key, 13)
    p = {
        "noise": jax.random.uniform(ks[0], (Cn, M, S, S), jnp.float32, -1.0, 1.0),
        "w1_g": jax.random.normal(ks[1], (O, cpg), jnp.float32) / np.sqrt(cpg),
        "b1": 0.1 * jax.random.normal(ks[2], (O,), jnp.float32),
        "gamma1": 1.0 + 0.1 * jax.random.normal(ks[3], (O,), jnp.float32),
        "beta1": 0.1 * jax.random.normal(ks[4], (O,), jnp.float32),
        "mean1": 0.1 * jax.random.normal(ks[5], (O,), jnp.float32),
        "var1": jnp.abs(jax.random.normal(ks[6], (O,), jnp.float32)) + 0.5,
    }
    if mix_maps:
        p.update({
            "w2": jax.random.normal(ks[7], (O, O), jnp.float32) / np.sqrt(O),
            "b2": 0.1 * jax.random.normal(ks[8], (O,), jnp.float32),
            "gamma2": 1.0 + 0.1 * jax.random.normal(ks[9], (O,), jnp.float32),
            "beta2": 0.1 * jax.random.normal(ks[10], (O,), jnp.float32),
            "mean2": 0.1 * jax.random.normal(ks[11], (O,), jnp.float32),
            "var2": jnp.abs(jax.random.normal(ks[12], (O,), jnp.float32)) + 0.5,
        })
    return p


def init_block_params(key, cfg):
    C, O = cfg["in_channels"], cfg["out_channels"]
    M, S, s = cfg["nmasks"], cfg["input_size"], cfg["stride"]
    k1, k2, k3 = jax.random.split(key, 3)
    p = {
        "layer1": _init_layer_params(k1, C=C, O=O, M=M, S=S,
                                     unique_masks=cfg["unique_masks"],
                                     mix_maps=cfg["mix_maps"]),
        "layer2": _init_layer_params(k2, C=O, O=O, M=M, S=S // s,
                                     unique_masks=cfg["unique_masks"],
                                     mix_maps=cfg["mix_maps"]),
    }
    if cfg["with_shortcut"]:
        ks = jax.random.split(k3, 5)
        p["shortcut"] = {
            "w": jax.random.normal(ks[0], (O, C), jnp.float32) / np.sqrt(C),
            "gamma": 1.0 + 0.1 * jax.random.normal(ks[1], (O,), jnp.float32),
            "beta": 0.1 * jax.random.normal(ks[2], (O,), jnp.float32),
            "mean": 0.1 * jax.random.normal(ks[3], (O,), jnp.float32),
            "var": jnp.abs(jax.random.normal(ks[4], (O,), jnp.float32)) + 0.5,
        }
    return p


def _dense_grouped_weight_mmajor(w_g, C, M, O):
    """Grouped 1x1 conv weight -> dense (O, M*C); columns ordered m*C + c."""
    G = C if M != 1 else 1
    cpg, opg = (C * M) // G, O // G
    wg = np.asarray(w_g)
    w = np.zeros((O, M * C), np.float32)
    for o in range(O):
        g = o // opg
        for j in range(cpg):
            cm = g * cpg + j            # original (c-major) input channel index
            c, m = cm // M, cm % M
            w[o, m * C + c] = wg[o, j]
    return jnp.asarray(w)


def _prepare_layer(raw, *, C, O, M, use_act, mix_maps, level):
    S = raw["noise"].shape[-1]
    HW = S * S
    scale1 = raw["gamma1"] / jnp.sqrt(raw["var1"] + EPS)
    shift1 = raw["beta1"] + (raw["b1"] - raw["mean1"]) * scale1
    w1_eff = _dense_grouped_weight_mmajor(raw["w1_g"], C, M, O) * scale1[:, None]

    noise = raw["noise"].reshape(-1, M, HW)                  # (Cn, M, HW)
    if noise.shape[0] == 1:
        noise = jnp.broadcast_to(noise, (C, M, HW))
    noise_mm = jnp.transpose(noise, (1, 0, 2))               # (M, C, HW), m-major

    prep = dict(C=C, O=O, M=M, use_act=use_act, mix_maps=mix_maps)
    if use_act:
        prep["w1_mOC"] = jnp.transpose(w1_eff.reshape(O, M, C), (1, 0, 2))
        prep["noise_scaled"] = jnp.float32(level) * noise_mm
        prep["shift1"] = shift1.reshape(O, 1)
    else:
        # fold the batch-invariant noise contribution AND the per-channel shift
        # into one per-lane bias; collapse the M copies of x into one matmul.
        prep["w1_collapsed"] = w1_eff.reshape(O, M, C).sum(axis=1)
        prep["nbias"] = (jnp.float32(level)
                         * jnp.dot(w1_eff, noise_mm.reshape(M * C, HW))
                         + shift1[:, None])
    if mix_maps:
        scale2 = raw["gamma2"] / jnp.sqrt(raw["var2"] + EPS)
        prep["w2_eff"] = raw["w2"] * scale2[:, None]
        prep["shift2"] = (raw["beta2"] + (raw["b2"] - raw["mean2"]) * scale2
                          ).reshape(O, 1)
    return prep


def prepare_block_params(raw, cfg):
    C, O, M = cfg["in_channels"], cfg["out_channels"], cfg["nmasks"]
    prep = {
        "layer1": _prepare_layer(raw["layer1"], C=C, O=O, M=M,
                                 use_act=cfg["use_act"], mix_maps=cfg["mix_maps"],
                                 level=cfg["level"]),
        "layer2": _prepare_layer(raw["layer2"], C=O, O=O, M=M,
                                 use_act=cfg["use_act"], mix_maps=cfg["mix_maps"],
                                 level=cfg["level"]),
    }
    if "shortcut" in raw:
        sc = raw["shortcut"]
        scale = sc["gamma"] / jnp.sqrt(sc["var"] + EPS)
        prep["shortcut"] = {"w_eff": sc["w"] * scale[:, None],
                            "shift": (sc["beta"] - sc["mean"] * scale).reshape(O, 1)}
    return prep


# ----------------------------------------------------------------------------
# Pure-JAX reference (mirrors the PyTorch forward exactly)
# ----------------------------------------------------------------------------
def _bn_ref(z, gamma, beta, mean, var):
    c = lambda v: v[None, :, None, None]
    return (z - c(mean)) / jnp.sqrt(c(var) + EPS) * c(gamma) + c(beta)


def _perturb_layer_ref(raw, x, *, O, M, level, use_act, mix_maps):
    N, C, H, W = x.shape
    y = x[:, :, None, :, :] + level * raw["noise"][None]     # (N, C, M, H, W)
    if use_act:
        y = jnp.maximum(y, 0.0)
    y = y.reshape(N, C * M, H, W)
    G = C if M != 1 else 1
    if G == 1:
        z = jnp.einsum("oc,nchw->nohw", raw["w1_g"], y)
    else:
        opg, cpg = O // G, (C * M) // G
        wg = raw["w1_g"].reshape(G, opg, cpg)
        yg = y.reshape(N, G, cpg, H, W)
        z = jnp.einsum("goj,ngjhw->ngohw", wg, yg).reshape(N, O, H, W)
    z = z + raw["b1"][None, :, None, None]
    z = jnp.maximum(_bn_ref(z, raw["gamma1"], raw["beta1"], raw["mean1"], raw["var1"]), 0.0)
    if mix_maps:
        z = jnp.einsum("oc,nchw->nohw", raw["w2"], z) + raw["b2"][None, :, None, None]
        z = jnp.maximum(_bn_ref(z, raw["gamma2"], raw["beta2"], raw["mean2"], raw["var2"]), 0.0)
    return z


def perturb_basic_block_ref(raw, x, cfg):
    O, M, s = cfg["out_channels"], cfg["nmasks"], cfg["stride"]
    y = _perturb_layer_ref(raw["layer1"], x, O=O, M=M, level=cfg["level"],
                           use_act=cfg["use_act"], mix_maps=cfg["mix_maps"])
    if s > 1:
        N, _, H, W = y.shape
        yw = y.reshape(N, O, H // s, s, W // s, s)
        y = yw.max(axis=(3, 5)) if cfg["pool_type"] == "max" else yw.mean(axis=(3, 5))
    y = _perturb_layer_ref(raw["layer2"], y, O=O, M=M, level=cfg["level"],
                           use_act=cfg["use_act"], mix_maps=cfg["mix_maps"])
    if "shortcut" in raw:
        sc = raw["shortcut"]
        xs = x[:, :, ::s, ::s]
        r = _bn_ref(jnp.einsum("oc,nchw->nohw", sc["w"], xs),
                    sc["gamma"], sc["beta"], sc["mean"], sc["var"])
    else:
        r = x
    return jnp.maximum(y + r, 0.0)


# ----------------------------------------------------------------------------
if __name__ == "__main__":
    N = 2
    configs = [
        # downsampling block: stride-2 MAX pool (XLA) + conv shortcut, per-m loop, mix maps
        dict(in_channels=4, out_channels=8, stride=2, pool_type="max",
             nmasks=2, level=0.1, use_act=True, unique_masks=True, mix_maps=True,
             input_size=16, with_shortcut=True),
        # identity block: stride-1, identity shortcut, use_act=False fast path
        dict(in_channels=4, out_channels=4, stride=1, pool_type="avg",
             nmasks=2, level=0.2, use_act=False, unique_masks=False, mix_maps=False,
             input_size=16, with_shortcut=False),
        # downsampling block: stride-2 AVG pool fused into layer-1's epilogue
        dict(in_channels=4, out_channels=8, stride=2, pool_type="avg",
             nmasks=2, level=0.1, use_act=True, unique_masks=True, mix_maps=False,
             input_size=16, with_shortcut=True),
    ]

    key = jax.random.PRNGKey(0)
    for i, cfg in enumerate(configs):
        kp, kx = jax.random.split(jax.random.fold_in(key, i))
        raw = init_block_params(kp, cfg)
        prep = prepare_block_params(raw, cfg)
        x = jax.random.normal(
            kx, (N, cfg["in_channels"], cfg["input_size"], cfg["input_size"]),
            jnp.float32)

        out = perturb_basic_block_forward(prep, x, cfg)
        out = jax.block_until_ready(out)

        ref = perturb_basic_block_ref(raw, x, cfg)
        np.testing.assert_allclose(np.asarray(out), np.asarray(ref),
                                   rtol=1e-4, atol=1e-4)
        S2 = cfg["input_size"] // cfg["stride"]
        assert out.shape == (N, cfg["out_channels"], S2, S2)

    print("KERNEL_OK")
</pallas_src>

<mosaic_0001>
module attributes {stable_mosaic.version = 11 : i64} {
  func.func @_copy(%arg0: i32, %arg1: memref<8x128xf32, #tpu.memory_space<vmem>>, %arg2: memref<8x128xf32, #tpu.memory_space<vmem>>) attributes {dimension_semantics = [#tpu.dimension_semantics<arbitrary>], iteration_bounds = array<i64: 2>, scalar_prefetch = 0 : i64, scratch_operands = 0 : i64, tpu.core_type = #tpu.core_type<tc>, window_params = [{pipeline_mode = #tpu.pipeline_mode<synchronous>, transform_indices = @transform_0, window_bounds = array<i64: 8, 128>}, {transform_indices = @transform_1, window_bounds = array<i64: 8, 128>}]} {
    %c0 = arith.constant 0 : index
    %c0_0 = arith.constant 0 : index
    %0 = vector.load %arg1[%c0, %c0_0] : memref<8x128xf32, #tpu.memory_space<vmem>>, vector<8x128xf32>
    %c0_1 = arith.constant 0 : index
    %c0_2 = arith.constant 0 : index
    %1 = vector.load %arg2[%c0_1, %c0_2] : memref<8x128xf32, #tpu.memory_space<vmem>>, vector<8x128xf32>
    tpu.vector_store %arg2[%c0_1, %c0_2], %0 {strides = array<i32>} : memref<8x128xf32, #tpu.memory_space<vmem>>, vector<8x128xf32>,
    return
  }
  func.func @transform_0(%arg0: i32) -> (i32, i32) {
    %c0_i32 = arith.constant 0 : i32
    %c0_i32_0 = arith.constant 0 : i32
    %c0_i32_1 = arith.constant 0 : i32
    return %c0_i32, %c0_i32_0 : i32, i32
  }
  func.func @transform_1(%arg0: i32) -> (i32, i32) {
    %c0_i32 = arith.constant 0 : i32
    %c0_i32_0 = arith.constant 0 : i32
    return %arg0, %c0_i32 : i32, i32
  }
}

module attributes {stable_mosaic.version = 11 : i64} {
  func.func @kernel(%arg0: i32, %arg1: memref<4x512xf32, #tpu.memory_space<vmem>>, %arg2: memref<2x4x256xf32, #tpu.memory_space<vmem>>, %arg3: memref<2x8x4xf32, #tpu.memory_space<vmem>>, %arg4: memref<8x1xf32, #tpu.memory_space<vmem>>, %arg5: memref<8x8xf32, #tpu.memory_space<vmem>>, %arg6: memref<8x1xf32, #tpu.memory_space<vmem>>, %arg7: memref<8x512xf32, #tpu.memory_space<vmem>>) attributes {dimension_semantics = [#tpu.dimension_semantics<parallel>], iteration_bounds = array<i64: 1>, scalar_prefetch = 0 : i64, scratch_operands = 0 : i64, tpu.core_type = #tpu.core_type<tc>, window_params = [{transform_indices = @transform_0, window_bounds = array<i64: 4, 512>}, {pipeline_mode = #tpu.pipeline_mode<synchronous>, transform_indices = @transform_1, window_bounds = array<i64: 2, 4, 256>}, {pipeline_mode = #tpu.pipeline_mode<synchronous>, transform_indices = @transform_2, window_bounds = array<i64: 2, 8, 4>}, {pipeline_mode = #tpu.pipeline_mode<synchronous>, transform_indices = @transform_3, window_bounds = array<i64: 8, 1>}, {pipeline_mode = #tpu.pipeline_mode<synchronous>, transform_indices = @transform_4, window_bounds = array<i64: 8, 8>}, {pipeline_mode = #tpu.pipeline_mode<synchronous>, transform_indices = @transform_5, window_bounds = array<i64: 8, 1>}, {transform_indices = @transform_6, window_bounds = array<i64: 8, 512>}]} {
    %c0 = arith.constant 0 : index
    %c0_0 = arith.constant 0 : index
    %0 = vector.load %arg1[%c0, %c0_0] : memref<4x512xf32, #tpu.memory_space<vmem>>, vector<4x256xf32>
    %c0_1 = arith.constant 0 : index
    %c0_2 = arith.constant 0 : index
    %c0_3 = arith.constant 0 : index
    %1 = vector.load %arg2[%c0_1, %c0_2, %c0_3] : memref<2x4x256xf32, #tpu.memory_space<vmem>>, vector<1x4x256xf32>
    %2 = vector.shape_cast %1 : vector<1x4x256xf32> to vector<4x256xf32>
    %3 = arith.addf %0, %2 : vector<4x256xf32>
    %cst = arith.constant 0.000000e+00 : f32
    %4 = vector.broadcast %cst : f32 to vector<4x256xf32>
    %5 = arith.maximumf %3, %4 : vector<4x256xf32>
    %c0_4 = arith.constant 0 : index
    %c0_5 = arith.constant 0 : index
    %c0_6 = arith.constant 0 : index
    %6 = vector.load %arg3[%c0_4, %c0_5, %c0_6] : memref<2x8x4xf32, #tpu.memory_space<vmem>>, vector<1x8x4xf32>
    %7 = vector.shape_cast %6 : vector<1x8x4xf32> to vector<8x4xf32>
    %cst_7 = arith.constant dense<0.000000e+00> : vector<8x256xf32>
    %8 = tpu.matmul %7, %5, %cst_7 {dimension_numbers = #tpu.dot_dimension_numbers<[1], [0], [0], [1], [0, 0, 1, 1], [], []>} : vector<8x4xf32>, vector<4x256xf32>, vector<8x256xf32> -> vector<8x256xf32>
    %c1 = arith.constant 1 : index
    %c0_8 = arith.constant 0 : index
    %c0_9 = arith.constant 0 : index
    %9 = vector.load %arg2[%c1, %c0_8, %c0_9] : memref<2x4x256xf32, #tpu.memory_space<vmem>>, vector<1x4x256xf32>
    %10 = vector.shape_cast %9 : vector<1x4x256xf32> to vector<4x256xf32>
    %11 = arith.addf %0, %10 : vector<4x256xf32>
    %cst_10 = arith.constant 0.000000e+00 : f32
    %12 = vector.broadcast %cst_10 : f32 to vector<4x256xf32>
    %13 = arith.maximumf %11, %12 : vector<4x256xf32>
    %c1_11 = arith.constant 1 : index
    %c0_12 = arith.constant 0 : index
    %c0_13 = arith.constant 0 : index
    %14 = vector.load %arg3[%c1_11, %c0_12, %c0_13] : memref<2x8x4xf32, #tpu.memory_space<vmem>>, vector<1x8x4xf32>
    %15 = vector.shape_cast %14 : vector<1x8x4xf32> to vector<8x4xf32>
    %cst_14 = arith.constant dense<0.000000e+00> : vector<8x256xf32>
    %16 = tpu.matmul %15, %13, %cst_14 {dimension_numbers = #tpu.dot_dimension_numbers<[1], [0], [0], [1], [0, 0, 1, 1], [], []>} : vector<8x4xf32>, vector<4x256xf32>, vector<8x256xf32> -> vector<8x256xf32>
    %17 = arith.addf %8, %16 : vector<8x256xf32>
    %c0_15 = arith.constant 0 : index
    %c0_16 = arith.constant 0 : index
    %18 = vector.load %arg4[%c0_15, %c0_16] : memref<8x1xf32, #tpu.memory_space<vmem>>, vector<8x1xf32>
    %19 = vector.broadcast %18 : vector<8x1xf32> to vector<8x256xf32>
    %20 = arith.addf %17, %19 : vector<8x256xf32>
    %cst_17 = arith.constant 0.000000e+00 : f32
    %21 = vector.broadcast %cst_17 : f32 to vector<8x256xf32>
    %22 = arith.maximumf %20, %21 : vector<8x256xf32>
    %c0_18 = arith.constant 0 : index
    %c0_19 = arith.constant 0 : index
    %23 = vector.load %arg5[%c0_18, %c0_19] : memref<8x8xf32, #tpu.memory_space<vmem>>, vector<8x8xf32>
    %cst_20 = arith.constant dense<0.000000e+00> : vector<8x256xf32>
    %24 = tpu.matmul %23, %22, %cst_20 {dimension_numbers = #tpu.dot_dimension_numbers<[1], [0], [0], [1], [0, 0, 1, 1], [], []>} : vector<8x8xf32>, vector<8x256xf32>, vector<8x256xf32> -> vector<8x256xf32>
    %c0_21 = arith.constant 0 : index
    %c0_22 = arith.constant 0 : index
    %25 = vector.load %arg6[%c0_21, %c0_22] : memref<8x1xf32, #tpu.memory_space<vmem>>, vector<8x1xf32>
    %26 = vector.broadcast %25 : vector<8x1xf32> to vector<8x256xf32>
    %27 = arith.addf %24, %26 : vector<8x256xf32>
    %cst_23 = arith.constant 0.000000e+00 : f32
    %28 = vector.broadcast %cst_23 : f32 to vector<8x256xf32>
    %29 = arith.maximumf %27, %28 : vector<8x256xf32>
    %c0_24 = arith.constant 0 : index
    %c0_25 = arith.constant 0 : index
    %30 = vector.load %arg7[%c0_24, %c0_25] : memref<8x512xf32, #tpu.memory_space<vmem>>, vector<8x256xf32>
    tpu.vector_store %arg7[%c0_24, %c0_25], %29 {strides = array<i32>} : memref<8x512xf32, #tpu.memory_space<vmem>>, vector<8x256xf32>,
    %c0_26 = arith.constant 0 : index
    %c256 = arith.constant 256 : index
    %31 = vector.load %arg1[%c0_26, %c256] : memref<4x512xf32, #tpu.memory_space<vmem>>, vector<4x256xf32>
    %c0_27 = arith.constant 0 : index
    %c0_28 = arith.constant 0 : index
    %c0_29 = arith.constant 0 : index
    %32 = vector.load %arg2[%c0_27, %c0_28, %c0_29] : memref<2x4x256xf32, #tpu.memory_space<vmem>>, vector<1x4x256xf32>
    %33 = vector.shape_cast %32 : vector<1x4x256xf32> to vector<4x256xf32>
    %34 = arith.addf %31, %33 : vector<4x256xf32>
    %cst_30 = arith.constant 0.000000e+00 : f32
    %35 = vector.broadcast %cst_30 : f32 to vector<4x256xf32>
    %36 = arith.maximumf %34, %35 : vector<4x256xf32>
    %c0_31 = arith.constant 0 : index
    %c0_32 = arith.constant 0 : index
    %c0_33 = arith.constant 0 : index
    %37 = vector.load %arg3[%c0_31, %c0_32, %c0_33] : memref<2x8x4xf32, #tpu.memory_space<vmem>>, vector<1x8x4xf32>
    %38 = vector.shape_cast %37 : vector<1x8x4xf32> to vector<8x4xf32>
    %cst_34 = arith.constant dense<0.000000e+00> : vector<8x256xf32>
    %39 = tpu.matmul %38, %36, %cst_34 {dimension_numbers = #tpu.dot_dimension_numbers<[1], [0], [0], [1], [0, 0, 1, 1], [], []>} : vector<8x4xf32>, vector<4x256xf32>, vector<8x256xf32> -> vector<8x256xf32>
    %c1_35 = arith.constant 1 : index
    %c0_36 = arith.constant 0 : index
    %c0_37 = arith.constant 0 : index
    %40 = vector.load %arg2[%c1_35, %c0_36, %c0_37] : memref<2x4x256xf32, #tpu.memory_space<vmem>>, vector<1x4x256xf32>
    %41 = vector.shape_cast %40 : vector<1x4x256xf32> to vector<4x256xf32>
    %42 = arith.addf %31, %41 : vector<4x256xf32>
    %cst_38 = arith.constant 0.000000e+00 : f32
    %43 = vector.broadcast %cst_38 : f32 to vector<4x256xf32>
    %44 = arith.maximumf %42, %43 : vector<4x256xf32>
    %c1_39 = arith.constant 1 : index
    %c0_40 = arith.constant 0 : index
    %c0_41 = arith.constant 0 : index
    %45 = vector.load %arg3[%c1_39, %c0_40, %c0_41] : memref<2x8x4xf32, #tpu.memory_space<vmem>>, vector<1x8x4xf32>
    %46 = vector.shape_cast %45 : vector<1x8x4xf32> to vector<8x4xf32>
    %cst_42 = arith.constant dense<0.000000e+00> : vector<8x256xf32>
    %47 = tpu.matmul %46, %44, %cst_42 {dimension_numbers = #tpu.dot_dimension_numbers<[1], [0], [0], [1], [0, 0, 1, 1], [], []>} : vector<8x4xf32>, vector<4x256xf32>, vector<8x256xf32> -> vector<8x256xf32>
    %48 = arith.addf %39, %47 : vector<8x256xf32>
    %c0_43 = arith.constant 0 : index
    %c0_44 = arith.constant 0 : index
    %49 = vector.load %arg4[%c0_43, %c0_44] : memref<8x1xf32, #tpu.memory_space<vmem>>, vector<8x1xf32>
    %50 = vector.broadcast %49 : vector<8x1xf32> to vector<8x256xf32>
    %51 = arith.addf %48, %50 : vector<8x256xf32>
    %cst_45 = arith.constant 0.000000e+00 : f32
    %52 = vector.broadcast %cst_45 : f32 to vector<8x256xf32>
    %53 = arith.maximumf %51, %52 : vector<8x256xf32>
    %c0_46 = arith.constant 0 : index
    %c0_47 = arith.constant 0 : index
    %54 = vector.load %arg5[%c0_46, %c0_47] : memref<8x8xf32, #tpu.memory_space<vmem>>, vector<8x8xf32>
    %cst_48 = arith.constant dense<0.000000e+00> : vector<8x256xf32>
    %55 = tpu.matmul %54, %53, %cst_48 {dimension_numbers = #tpu.dot_dimension_numbers<[1], [0], [0], [1], [0, 0, 1, 1], [], []>} : vector<8x8xf32>, vector<8x256xf32>, vector<8x256xf32> -> vector<8x256xf32>
    %c0_49 = arith.constant 0 : index
    %c0_50 = arith.constant 0 : index
    %56 = vector.load %arg6[%c0_49, %c0_50] : memref<8x1xf32, #tpu.memory_space<vmem>>, vector<8x1xf32>
    %57 = vector.broadcast %56 : vector<8x1xf32> to vector<8x256xf32>
    %58 = arith.addf %55, %57 : vector<8x256xf32>
    %cst_51 = arith.constant 0.000000e+00 : f32
    %59 = vector.broadcast %cst_51 : f32 to vector<8x256xf32>
    %60 = arith.maximumf %58, %59 : vector<8x256xf32>
    %c0_52 = arith.constant 0 : index
    %c256_53 = arith.constant 256 : index
    %61 = vector.load %arg7[%c0_52, %c256_53] : memref<8x512xf32, #tpu.memory_space<vmem>>, vector<8x256xf32>
    tpu.vector_store %arg7[%c0_52, %c256_53], %60 {strides = array<i32>} : memref<8x512xf32, #tpu.memory_space<vmem>>, vector<8x256xf32>,
    return
  }
  func.func @transform_0(%arg0: i32) -> (i32, i32) {
    %c0_i32 = arith.constant 0 : i32
    %c0_i32_0 = arith.constant 0 : i32
    return %c0_i32, %arg0 : i32, i32
  }
  func.func @transform_1(%arg0: i32) -> (i32, i32, i32) {
    %c0_i32 = arith.constant 0 : i32
    %c0_i32_0 = arith.constant 0 : i32
    %c0_i32_1 = arith.constant 0 : i32
    %c0_i32_2 = arith.constant 0 : i32
    return %c0_i32, %c0_i32_0, %c0_i32_1 : i32, i32, i32
  }
  func.func @transform_2(%arg0: i32) -> (i32, i32, i32) {
    %c0_i32 = arith.constant 0 : i32
    %c0_i32_0 = arith.constant 0 : i32
    %c0_i32_1 = arith.constant 0 : i32
    %c0_i32_2 = arith.constant 0 : i32
    return %c0_i32, %c0_i32_0, %c0_i32_1 : i32, i32, i32
  }
  func.func @transform_3(%arg0: i32) -> (i32, i32) {
    %c0_i32 = arith.constant 0 : i32
    %c0_i32_0 = arith.constant 0 : i32
    %c0_i32_1 = arith.constant 0 : i32
    return %c0_i32, %c0_i32_0 : i32, i32
  }
  func.func @transform_4(%arg0: i32) -> (i32, i32) {
    %c0_i32 = arith.constant 0 : i32
    %c0_i32_0 = arith.constant 0 : i32
    %c0_i32_1 = arith.constant 0 : i32
    return %c0_i32, %c0_i32_0 : i32, i32
  }
  func.func @transform_5(%arg0: i32) -> (i32, i32) {
    %c0_i32 = arith.constant 0 : i32
    %c0_i32_0 = arith.constant 0 : i32
    %c0_i32_1 = arith.constant 0 : i32
    return %c0_i32, %c0_i32_0 : i32, i32
  }
  func.func @transform_6(%arg0: i32) -> (i32, i32) {
    %c0_i32 = arith.constant 0 : i32
    %c0_i32_0 = arith.constant 0 : i32
    return %c0_i32, %arg0 : i32, i32
  }
}

</mosaic_0001>

<bundles_post_ra>
// kernel: tpu_custom_call.1
= control target key start
LH: loop header
LB: loop body
LE: loop exit
PB: predicated region body
PF: predicated region fallthrough
CT: control target
= control target key end

     0   :  { %6 = vsyncpa [#allocation3], 0  ;;  %s440_s0 = inlined_call_operand.hbm [shape: f32[8,128], index: 0, kind: input, shape index: {}]   ;;  %s441_s1 = inlined_call_operand.hbm [shape: f32[16,128], index: 1, kind: output, shape index: {}]  }
   0x1   :  { %7 = vsyncpa [#allocation4], 0 }
   0x2   :  { %9 = vsyncpa [#allocation4 + $0x1], 0  ;;  %s356_s6 = smov 0   ;;  %s358_s7 = smov 0  }
   0x3   :  { %s360_s8 = smov 0   ;;  %s362_s9 = smov 0  }
   0x4 LB: > { %s377_s10 = sadd.s32 4294967295, %s343_s9   ;;  %s187_s11 = sadd.s32 4294967294, %s343_s9   ;;  %s343_s9 = sphi %s362_s9, %s447_s9   ;;  %s339_s8 = sphi %s360_s8, %s446_s8   ;;  %s335_s7 = sphi %s358_s7, %s445_s7   ;;  %s331_s6 = sphi %s356_s6, %s444_s6  }
   0x5   : > { %s381_s12 = sadd.s32 1, %s343_s9   ;;  %s43_s13 = sadd.s32 1, %s339_s8 }
   0x6   : > { %s40_s14 = ssub.s32 %s343_s9, %s381_s12  ;;  %p53_p0 = scmp.ne.s32.totalorder %s339_s8, %s335_s7 }
   0x7   : > { %p41_p1 = scmp.eq.s32.totalorder %s40_s14, 0  ;;  %p54_p2 = scmp.eq.s32.totalorder %s377_s10, 1 }
   0x8   : > { %p59_p3 = scmp.ne.s32.totalorder %s335_s7, %s331_s6  ;;  %p60_p4 = scmp.eq.s32.totalorder %s187_s11, 1 }
   0x9   : > { %s392_s15 = scalar_select %p41_p1, %s339_s8, %s43_s13  }
   0xa   : > { %p394_p5 = por %p54_p2, %p53_p0  ;;  %p398_p6 = por %p60_p4, %p59_p3 }
   0xb   : > { %p188_p7 = scmp.ge.s32.totalorder %s343_s9, 1  ;;  %p67_p8 = scmp.lt.s32.totalorder %s343_s9, 3 }
   0xc   : > { %p211_p9 = scmp.eq.s32.totalorder %s377_s10, 0  ;;  %s79_s20 = sshll.u32 %s440_s0, 4  ;;  %s80_s20 = int_to_ptr.hbm [resolvable:$true] %s79_s20 }
   0xd   : > { %p68_p10 = pnand %p188_p7, %p67_p8  ;;  %s345_s21 = smov [#allocation2]  }
   0xe   : > { %s81_s22 = sshll.u32 %s345_s21, 4  ;;  %s82_s22 = int_to_ptr.vmem [resolvable:$true] %s81_s22 }
   0xf   : > { %p203_p11 = pneg %p68_p10  ;;  %94 = sbr.rel (%p68_p10) target bundleno = 37 (0x25), region = 24 }
  0x11   : > { %p204_p12 = pnand %p211_p9, %p203_p11 }
  0x13   : > { %206 = dma.hbm_to_vmem [thread:$0]  (!%p204_p12), %s80_s20, 128, %s82_s22, [#allocation3]  }
  0x14   : > { %322 = dma.done.wait (%p211_p9), [#allocation3], 128  }
  0x15   : > { %324 = vsyncadd (%p211_p9), [#allocation3], 4294967168  ;;  %s107_s23 = sand.u32 1, %s335_s7   ;;  %s194_s24 = sshll.u32 %s377_s10, 3  ;;  %v110_v0 = vld [vmem:[#allocation2] sm:$0xff] }
  0x16   : > { %s192_s25 = sshll.u32 %s107_s23, 3  ;;  %s123_s28 = scalar_lea.hbm %s441_s1, %s194_s24 }
  0x17   : > { %s109_s29 = scalar_lea.vmem [#allocation5], %s192_s25  ;;  %s127_s2 = sshll.u32 %s123_s28, 4  ;;  %s128_s2 = int_to_ptr.hbm [resolvable:$true] %s127_s2 }
  0x18   : > { %s125_s30 = sshll.u32 %s109_s29, 4  ;;  %111 = vst [vmem:[%s109_s29] sm:$0xff] %v110_v0  ;;  %s113_s3 = scalar_lea.sflag [#allocation4], %s107_s23  ;;  %s126_s30 = int_to_ptr.vmem [resolvable:$true] %s125_s30 }
  0x19   : > { %s291_s4 = sshra.s32 %s128_s2, 4  ;;  %s297_s13 = scalar_lea.hbm %s441_s1, 16  ;;  %s292_s4 = int_to_ptr.hbm [resolvable:$true] %s291_s4 }
  0x1a   : > { %s293_s5 = scalar_lea.hbm %s292_s4, 8  ;;  %p298_p2 = scmp.lt.s32.totalorder %s292_s4, %s441_s1 }
  0x1b   : > { %p294_p13 = scmp.ne.s32.totalorder %s292_s4, %s293_s5  ;;  %p299_p3 = scmp.lt.s32.totalorder %s297_s13, %s293_s5 }
  0x1d   : > { %p295_p0 = pnand %p294_p13, %p394_p5  ;;  %p300_p4 = por %p299_p3, %p298_p2 }
  0x1f   : > { %p296_p1 = pneg %p295_p0 }
  0x21   : > { %p301_p7 = pnand %p300_p4, %p296_p1 }
  0x23   : > { %304 = shalt.err (!%p301_p7)
}
  0x24   : > { %201 = dma.vmem_to_hbm [thread:$0]  (%p394_p5), %s126_s30, 128, %s128_s2, %s113_s3  }
  0x25 PF: > { %p213_p8 = scmp.ge.s32.totalorder %s343_s9, 2  ;;  %s139_s19 = sand.u32 1, %s331_s6  }
  0x26   : > { %s140_s20 = scalar_lea.sflag [#allocation4], %s139_s19 }
  0x27   : > { %p208_p9 = pnand %p213_p8, %p398_p6 }
  0x29   : > { %p209_p10 = pneg %p208_p9 }
  0x2b   : > { %326 = dma.done.wait (%p209_p10), %s140_s20, 128  }
  0x2c   : > { %328 = vsyncadd (%p209_p10), %s140_s20, 4294967168  ;;  %p12_p11 = scmp.ge.s32.totalorder %s381_s12, 4   ;;  %s444_s6 = smov %s335_s7 }
  0x2d   : > { %s445_s7 = smov %s339_s8  ;;  %s446_s8 = smov %s392_s15 }
  0x2e   : > { %s447_s9 = smov %s381_s12  ;;  %14 = sbr.rel (!%p12_p11) target bundleno = 4 (0x4), region = 61 }
  0x33   :  { %146 = vsyncpa [#allocation3], 1 }
  0x34   :  { %148 = vsyncpa [#allocation3 + $0x1], 1 }
  0x35   :  { %149 = vsyncpa [#allocation4], 1 }
  0x36   :  { %151 = vsyncpa [#allocation4 + $0x1], 1 }

// kernel: tpu_custom_call.1
= control target key start
LH: loop header
LB: loop body
LE: loop exit
PB: predicated region body
PF: predicated region fallthrough
CT: control target
= control target key end

     0   :  { %11 = vsyncpa [#allocation3], 0  ;;  %s579_s0 = inlined_call_operand.vmem [shape: f32[4,512], index: 0, kind: input, shape index: {}]   ;;  %s580_s1 = inlined_call_operand.vmem [shape: f32[2,4,256], index: 1, kind: input, shape index: {}]   ;;  %s581_s2 = inlined_call_operand.vmem [shape: f32[2,8,4], index: 2, kind: input, shape index: {}]   ;;  %s582_s3 = inlined_call_operand.vmem [shape: f32[8,1], index: 3, kind: input, shape index: {}]   ;;  %s583_s4 = inlined_call_operand.hbm [shape: f32[8,8], index: 4, kind: input, shape index: {}]   ;;  %s584_s5 = inlined_call_operand.vmem [shape: f32[8,1], index: 5, kind: input, shape index: {}]   ;;  %s585_s6 = inlined_call_operand.hbm [shape: f32[8,512], index: 6, kind: output, shape index: {}]  }
   0x1   :  { %12 = vsyncpa [#allocation4], 0  ;;  %s26_s23 = sshll.u32 %s583_s4, 4  ;;  %s491_s24 = smov [#allocation2]   ;;  %s27_s23 = int_to_ptr.hbm [resolvable:$true] %s26_s23 }
   0x2   :  { %s28_s25 = sshll.u32 %s491_s24, 4  ;;  %s29_s25 = int_to_ptr.vmem [resolvable:$true] %s28_s25 }
   0x3   :  { %31 = dma.hbm_to_vmem [thread:$0]  %s27_s23, 128, %s29_s25, [#allocation3]  }
   0x4   :  { %487 = dma.done.wait [#allocation3], 128  }
   0x5   :  { %488 = vsyncadd [#allocation3], 4294967168  ;;  %v492_v0 = vmov 0   ;;  %v38_v1 = vld [vmem:[%s579_s0] sm:$0xff]  ;;  %v410_v2 = vld [vmem:[%s580_s1 + $0x8] sm:$0xff]  ;;  %vm57_vm0 = vcmask 1043456  }
   0x6   :  { %437 = vset.pattern.permute.xlu0 %v492_v0  ;;  %438 = vset.pattern.permute.xlu1 %v492_v0  ;;  %v39_v3 = vld [vmem:[%s580_s1] sm:$0xff]  ;;  %v45_v4 = vadd.f32 %v410_v2, %v38_v1  ;;  %v218_v5 = vld [vmem:[%s579_s0 + $0x8] sm:$0xff]  ;;  %vm53_vm1 = vcmask 31744   ;;  %vm170_vm2 = vcmask 64512   ;;  %s400_s16 = sshll.u32 %s585_s6, 4  ;;  %s401_s16 = int_to_ptr.hbm [resolvable:$true] %s400_s16 }
   0x7   :  { %v220_v6 = vadd.f32 %v218_v5, %v39_v3  ;;  %v153_v7 = vld [vmem:[%s582_s3] sm:$0xff]  ;;  %v40_v9 = vadd.f32 %v39_v3, %v38_v1  ;;  %v411_v11 = vld [vmem:[%s581_s2 + $0x8] sm:$0xff]  ;;  %v224_v14 = vadd.f32 %v410_v2, %v218_v5 }
   0x8   :  { %v46_v8 = vmax.f32 %v45_v4, 0.0  ;;  %156 = vperm.xlu0 %437, %v153_v7   ;;  %v42_v16 = vld [vmem:[%s581_s2] sm:$0xff]  ;;  %v163_v34 = vld [vmem:[#allocation2] sm:$0xff] }
   0x9   :  { %v41_v10 = vmax.f32 %v40_v9, 0.0  ;;  %v225_v15 = vmax.f32 %v224_v14, 0.0  ;;  %v221_v19 = vmax.f32 %v220_v6, 0.0  ;;  %v164_v22 = vld [vmem:[%s584_s5] sm:$0xff]  ;;  %s493_s5 = smov [#allocation5]  }
   0xa   :  { %50 = vst [vmem:[#allocation1] ss:$2 sm:$0xff] %v46_v8  ;;  %167 = vperm.xlu1 %438, %v164_v22   ;;  %s398_s13 = sshll.u32 %s493_s5, 4  ;;  %s399_s13 = int_to_ptr.vmem [resolvable:$true] %s398_s13 }
  0x10   :  { %332 = vperm.xlu0 %437, %v153_v7  }
  0x11   :  { %v51_v12 = vld.sshfl [vmem:[#allocation1] sm:$0xff pattern:$0x75316420]  ;;  %v52_v13 = vld.sshfl [vmem:[#allocation1 + $0x8] sm:$0xff pattern:$0x75316420] }
  0x12   :  { %103 = vst [vmem:[#allocation1] ss:$2 sm:$0xff] %v41_v10  ;;  %412 = vmatpush.msk.msra.mxu0 %vm57_vm0, %v51_v12  ;;  %414 = vmatpush.msk.msra.mxu1 %vm57_vm0, %v52_v13 }
  0x13   :  { %413 = vmatmul.msk.f32.vlgmr.msra.gmra.mxu0 %vm53_vm1, %v411_v11  ;;  %415 = vmatmul.msk.f32.vlgmr.msra.gmra.mxu1 %vm53_vm1, %v411_v11 }
  0x14   :  { %343 = vperm.xlu1 %438, %v164_v22  }
  0x19   :  { %v104_v17 = vld.sshfl [vmem:[#allocation1] sm:$0xff pattern:$0x75316420]  ;;  %v105_v18 = vld.sshfl [vmem:[#allocation1 + $0x8] sm:$0xff pattern:$0x75316420] }
  0x1a   :  { %416 = vmatpush.msk.msra.mxu2 %vm57_vm0, %v104_v17  ;;  %418 = vmatpush.msk.msra.mxu3 %vm57_vm0, %v105_v18  ;;  %228 = vst [vmem:[#allocation1] ss:$2 sm:$0xff] %v225_v15 }
  0x1b   :  { %417 = vmatmul.msk.f32.vlgmr.msra.gmra.mxu2 %vm53_vm1, %v42_v16  ;;  %419 = vmatmul.msk.f32.vlgmr.msra.gmra.mxu3 %vm53_vm1, %v42_v16 }
  0x21   :  { %v229_v20 = vld.sshfl [vmem:[#allocation1] sm:$0xff pattern:$0x75316420]  ;;  %v230_v21 = vld.sshfl [vmem:[#allocation1 + $0x8] sm:$0xff pattern:$0x75316420] }
  0x22   :  { %424 = vmatpush.msk.msrb.mxu2 %vm57_vm0, %v229_v20  ;;  %426 = vmatpush.msk.msrb.mxu3 %vm57_vm0, %v230_v21  ;;  %279 = vst [vmem:[#allocation1] ss:$2 sm:$0xff] %v221_v19 }
  0x23   :  { %425 = vmatmul.msk.f32.vlgmr.msrb.gmra.mxu2 %vm53_vm1, %v411_v11  ;;  %427 = vmatmul.msk.f32.vlgmr.msrb.gmra.mxu3 %vm53_vm1, %v411_v11 }
  0x29   :  { %v280_v35 = vld.sshfl [vmem:[#allocation1] sm:$0xff pattern:$0x75316420]  ;;  %v281_v36 = vld.sshfl [vmem:[#allocation1 + $0x8] sm:$0xff pattern:$0x75316420] }
  0x7a   :  { %v157_v29 = vpop.permute.xlu0 %156 }
  0x7c   :  { %v168_v37 = vpop.permute.xlu1 %167 }
  0x82   :  { %v333_v50 = vpop.permute.xlu0 %332 }
  0x86   :  { %v344_v55 = vpop.permute.xlu1 %343 }
  0x90   :  { %v79_v23 = vpop.f32.mrf.mxu0  ;;  %v99_v24 = vpop.f32.mrf.mxu1 }
  0x9e   :  { %v130_v25 = vpop.f32.mrf.mxu2  ;;  %v150_v26 = vpop.f32.mrf.mxu3 }
  0x9f   :  { %v131_v27 = vadd.f32 %v130_v25, %v79_v23  ;;  %v151_v28 = vadd.f32 %v150_v26, %v99_v24 }
  0xa1   :  { %v159_v30 = vadd.f32 %v157_v29, %v131_v27  ;;  %v160_v31 = vadd.f32 %v157_v29, %v151_v28 }
  0xa3   :  { %v161_v32 = vmax.f32 %v159_v30, 0.0  ;;  %v162_v33 = vmax.f32 %v160_v31, 0.0 }
  0xa5   :  { %189 = vmatpush.msrb.mxu0 %v161_v32  ;;  %209 = vmatpush.msrb.mxu1 %v162_v33 }
  0xa6   :  { %420 = vmatmul.msk.f32.vlgmr.msrb.gmra.mxu0 %vm170_vm2, %v163_v34  ;;  %421 = vmatmul.msk.f32.vlgmr.msrb.gmra.mxu1 %vm170_vm2, %v163_v34  ;;  %v255_v44 = vpop.f32.mrf.mxu2  ;;  %v275_v45 = vpop.f32.mrf.mxu3 }
  0xa7   :  { %428 = vmatpush.msk.msra.mxu0 %vm57_vm0, %v280_v35  ;;  %430 = vmatpush.msk.msra.mxu1 %vm57_vm0, %v281_v36 }
  0xae   :  { %429 = vmatmul.msk.f32.vlgmr.msra.gmra.mxu0 %vm53_vm1, %v42_v16  ;;  %431 = vmatmul.msk.f32.vlgmr.msra.gmra.mxu1 %vm53_vm1, %v42_v16 }
 0x123   :  { %v191_v38 = vpop.f32.mrf.mxu0  ;;  %v211_v39 = vpop.f32.mrf.mxu1 }
 0x124   :  { %v192_v40 = vadd.f32 %v191_v38, %v168_v37  ;;  %v212_v41 = vadd.f32 %v211_v39, %v168_v37 }
 0x126   :  { %v214_v42 = vmax.f32 %v192_v40, 0.0  ;;  %v215_v43 = vmax.f32 %v212_v41, 0.0 }
 0x128   :  { %216 = vst [vmem:[#allocation5] sm:$0xff] %v214_v42 }
 0x129   :  { %217 = vst [vmem:[#allocation5 + $0x8] sm:$0xff] %v215_v43 }
 0x12b   :  { %v306_v46 = vpop.f32.mrf.mxu0  ;;  %v326_v47 = vpop.f32.mrf.mxu1 }
 0x12c   :  { %v307_v48 = vadd.f32 %v306_v46, %v255_v44  ;;  %v327_v49 = vadd.f32 %v326_v47, %v275_v45 }
 0x12e   :  { %v335_v51 = vadd.f32 %v333_v50, %v307_v48  ;;  %v336_v52 = vadd.f32 %v333_v50, %v327_v49 }
 0x130   :  { %v337_v53 = vmax.f32 %v335_v51, 0.0  ;;  %v338_v54 = vmax.f32 %v336_v52, 0.0 }
 0x132   :  { %364 = vmatpush.msra.mxu2 %v337_v53  ;;  %384 = vmatpush.msra.mxu3 %v338_v54 }
 0x133   :  { %432 = vmatmul.msk.f32.vlgmr.msra.gmra.mxu2 %vm170_vm2, %v163_v34  ;;  %433 = vmatmul.msk.f32.vlgmr.msra.gmra.mxu3 %vm170_vm2, %v163_v34 }
 0x1b6   :  { %v366_v56 = vpop.f32.mrf.mxu2  ;;  %v386_v57 = vpop.f32.mrf.mxu3 }
 0x1b7   :  { %v367_v58 = vadd.f32 %v366_v56, %v344_v55  ;;  %v387_v59 = vadd.f32 %v386_v57, %v344_v55 }
 0x1b9   :  { %v389_v60 = vmax.f32 %v367_v58, 0.0  ;;  %v390_v61 = vmax.f32 %v387_v59, 0.0 }
 0x1bb   :  { %391 = vst [vmem:[#allocation5 + $0x10] sm:$0xff] %v389_v60 }
 0x1bc   :  { %392 = vst [vmem:[#allocation5 + $0x18] sm:$0xff] %v390_v61 }
 0x1bd   :  { %403 = dma.vmem_to_hbm [thread:$0]  %s399_s13, 512, %s401_s16, [#allocation4]  }
 0x1be   :  { %489 = dma.done.wait [#allocation4], 512  }
 0x1bf   :  { %490 = vsyncadd [#allocation4], 4294966784 }
 0x1c0   :  { %408 = vsyncpa [#allocation3], 1 }
 0x1c1   :  { %409 = vsyncpa [#allocation4], 1 }

</bundles_post_ra>
